<compile_context>
chip_gen: v7x
topology: tpu7x:2x2x1
jax: 0.10.0
libtpu: 0.0.40
codegen_flags: <defaults>
</compile_context>

<pallas_src>
import jax
import jax.numpy as jnp
from jax.experimental import pallas as pl
from jax.experimental.pallas import tpu as pltpu

LANE = 128     # lane (last-dim) alignment for channel axes
SUBLANE = 8    # sublane alignment for node axes


def _round_up(n, m):
    return ((n + m - 1) // m) * m


def _make_fused_sage_kernel(num_layers, dst_rows, out_valid):
    """Builds the fused multi-layer SAGE kernel body.

    Ref order: x, (A_counts, deg, W_stacked, bias) * num_layers, out.
    dst_rows[i] = padded number of destination rows of layer i.
    out_valid   = number of real (unpadded) output channels.
    """

    def kernel(*refs):
        x_ref, o_ref = refs[0], refs[-1]
        layer_refs = refs[1:-1]

        h = x_ref[...]                                     # bf16 (rows, c_pad)
        for i in range(num_layers):
            a_ref, deg_ref, w_ref, b_ref = layer_refs[4 * i:4 * i + 4]

            # mean aggregation: bf16 count-matmul on the MXU, 1/deg on the EUP
            agg = jnp.dot(a_ref[...], h, preferred_element_type=jnp.float32)
            agg = agg * pl.reciprocal(deg_ref[...], approx=True)

            # merged GEMM: [agg, x_dst] @ [W_l; W_r] + b   (bias lives in lin_l)
            cat = jnp.concatenate(
                [agg.astype(jnp.bfloat16), h[:dst_rows[i]]], axis=-1)
            out = jnp.dot(cat, w_ref[...],
                          preferred_element_type=jnp.float32) + b_ref[...]

            if i < num_layers - 1:
                # relu; dropout(p=0.5, training=False) is identity
                h = jnp.maximum(out, 0.0).astype(jnp.bfloat16)
            else:
                # log_softmax over the valid output channels only
                col = jax.lax.broadcasted_iota(jnp.int32, out.shape, 1)
                logits = jnp.where(col < out_valid, out, -1e30)
                m = jnp.max(logits, axis=-1, keepdims=True)
                shifted = logits - m
                lse = jnp.log(jnp.sum(jnp.exp(shifted), axis=-1, keepdims=True))
                o_ref[...] = (shifted - lse).astype(o_ref.dtype)

    return kernel


def _build_adj_and_deg(edge_index, n_dst_pad, n_src_pad):
    """Dense edge-count matrix (small ints, exact in bf16) + clamped degrees.

    Matches PyG scatter-mean: isolated targets aggregate to zero (deg clamp).
    """
    src, dst = edge_index[0], edge_index[1]
    counts = jnp.zeros((n_dst_pad, n_src_pad), jnp.float32).at[dst, src].add(1.0)
    deg = jnp.maximum(jnp.sum(counts, axis=1, keepdims=True), 1.0)
    return counts.astype(jnp.bfloat16), deg


def init_sage_params(key, in_channels, hidden_channels, out_channels, num_layers):
    """Raw f32 parameters per layer: (W_l, W_r, b) with b on lin_l only."""
    dims = [in_channels] + [hidden_channels] * (num_layers - 1) + [out_channels]
    params = []
    for i in range(num_layers):
        c_in, c_out = dims[i], dims[i + 1]
        key, k1, k2 = jax.random.split(key, 3)
        scale = 1.0 / jnp.sqrt(jnp.float32(c_in))
        w_l = jax.random.normal(k1, (c_in, c_out), jnp.float32) * scale
        w_r = jax.random.normal(k2, (c_in, c_out), jnp.float32) * scale
        b = jnp.zeros((c_out,), jnp.float32)
        params.append((w_l, w_r, b))
    return params


def pack_params(params):
    """Stack [W_l; W_r] per layer, zero-pad channels to 128, cast to bf16."""
    packed = []
    for w_l, w_r, b in params:
        c_in, c_out = w_l.shape
        c_in_p, c_out_p = _round_up(c_in, LANE), _round_up(c_out, LANE)
        w = jnp.zeros((2 * c_in_p, c_out_p), jnp.float32)
        w = w.at[:c_in, :c_out].set(w_l)                     # lin_l (agg path)
        w = w.at[c_in_p:c_in_p + c_in, :c_out].set(w_r)      # lin_r (root path)
        b_p = jnp.zeros((1, c_out_p), jnp.float32).at[0, :c_out].set(b)
        packed.append((w.astype(jnp.bfloat16), b_p))
    return packed


def sage_forward(packed_params, x, adjs, out_channels):
    """Fused multi-layer SAGE forward.

    adjs: list of (edge_index[2, E], (n_src, n_dst)) per layer (PyG-style).
    """
    num_layers = len(packed_params)
    assert len(adjs) == num_layers

    # Padded node counts per hop: rows entering layer 0 are x's nodes.
    row_pads = [_round_up(x.shape[0], SUBLANE)]
    for _, size in adjs:
        row_pads.append(_round_up(size[1], SUBLANE))

    # Pad features to lane width, cast to bf16 for the MXU.
    n0, c_in = x.shape
    c_in_p = _round_up(c_in, LANE)
    x_p = jnp.zeros((row_pads[0], c_in_p), jnp.float32).at[:n0, :c_in].set(x)
    x_p = x_p.astype(jnp.bfloat16)

    kernel_args = [x_p]
    for i, (edge_index, _) in enumerate(adjs):
        a, deg = _build_adj_and_deg(edge_index, row_pads[i + 1], row_pads[i])
        w, b = packed_params[i]
        kernel_args += [a, deg, w, b]

    vmem_spec = pl.BlockSpec(memory_space=pltpu.MemorySpace.VMEM)
    c_out_p = packed_params[-1][1].shape[1]
    kernel = _make_fused_sage_kernel(
        num_layers=num_layers,
        dst_rows=tuple(row_pads[1:]),
        out_valid=out_channels,
    )
    out_p = pl.pallas_call(
        kernel,
        out_shape=jax.ShapeDtypeStruct((row_pads[-1], c_out_p), jnp.float32),
        in_specs=[vmem_spec] * len(kernel_args),
        out_specs=vmem_spec,
    )(*kernel_args)
    return out_p[:adjs[-1][1][1], :out_channels]


def sage_reference(params, x, adjs):
    """Pure-JAX f32 reference (same semantics as the PyTorch module, eval mode)."""
    num_layers = len(params)
    for i, (edge_index, size) in enumerate(adjs):
        n_dst = size[1]
        src, dst = edge_index[0], edge_index[1]
        a = jnp.zeros((n_dst, x.shape[0]), jnp.float32).at[dst, src].add(1.0)
        deg = jnp.maximum(jnp.sum(a, axis=1, keepdims=True), 1.0)
        agg = (a @ x) / deg
        w_l, w_r, b = params[i]
        out = agg @ w_l + x[:n_dst] @ w_r + b
        if i != num_layers - 1:
            x = jnp.maximum(out, 0.0)
        else:
            x = jax.nn.log_softmax(out, axis=-1)
    return x


if __name__ == "__main__":
    key = jax.random.PRNGKey(0)

    in_channels, hidden_channels, out_channels, num_layers = 16, 32, 8, 2
    n0, n1, n2 = 64, 32, 16   # node counts shrinking per sampled hop

    key, kx, ke0s, ke0d, ke1s, ke1d, kp = jax.random.split(key, 7)
    x = jax.random.normal(kx, (n0, in_channels), jnp.float32)

    # layer 0: src nodes in [0, n0), dst nodes in [0, n1)
    e0 = 256
    edge_index0 = jnp.stack([
        jax.random.randint(ke0s, (e0,), 0, n0),
        jax.random.randint(ke0d, (e0,), 0, n1),
    ])
    # layer 1: src nodes in [0, n1), dst nodes in [0, n2)
    e1 = 128
    edge_index1 = jnp.stack([
        jax.random.randint(ke1s, (e1,), 0, n1),
        jax.random.randint(ke1d, (e1,), 0, n2),
    ])
    adjs = [(edge_index0, (n0, n1)), (edge_index1, (n1, n2))]

    params = init_sage_params(kp, in_channels, hidden_channels, out_channels,
                              num_layers)
    packed = pack_params(params)

    out = sage_forward(packed, x, adjs, out_channels)
    out = jax.block_until_ready(out)

    assert out.shape == (n2, out_channels)
    # rows of log_softmax must exp-sum to 1
    assert jnp.allclose(jnp.sum(jnp.exp(out), axis=-1), 1.0, atol=1e-3)
    # matches the pure-JAX f32 reference up to bf16 MXU precision
    ref = sage_reference(params, x, adjs)
    assert jnp.allclose(out, ref, atol=0.15), float(jnp.max(jnp.abs(out - ref)))
    print("KERNEL_OK")
</pallas_src>

<mosaic_0001>
module attributes {stable_mosaic.version = 11 : i64} {
  func.func @kernel(%arg0: memref<64x128xbf16, #tpu.memory_space<vmem>>, %arg1: memref<32x64xbf16, #tpu.memory_space<vmem>>, %arg2: memref<32x1xf32, #tpu.memory_space<vmem>>, %arg3: memref<256x128xbf16, #tpu.memory_space<vmem>>, %arg4: memref<1x128xf32, #tpu.memory_space<vmem>>, %arg5: memref<16x32xbf16, #tpu.memory_space<vmem>>, %arg6: memref<16x1xf32, #tpu.memory_space<vmem>>, %arg7: memref<256x128xbf16, #tpu.memory_space<vmem>>, %arg8: memref<1x128xf32, #tpu.memory_space<vmem>>, %arg9: memref<16x128xf32, #tpu.memory_space<vmem>>) attributes {dimension_semantics = [], scalar_prefetch = 0 : i64, scratch_operands = 0 : i64, tpu.core_type = #tpu.core_type<tc>} {
    %c0 = arith.constant 0 : index
    %c0_0 = arith.constant 0 : index
    %0 = vector.load %arg0[%c0, %c0_0] : memref<64x128xbf16, #tpu.memory_space<vmem>>, vector<64x128xbf16>
    %c0_1 = arith.constant 0 : index
    %c0_2 = arith.constant 0 : index
    %1 = vector.load %arg1[%c0_1, %c0_2] : memref<32x64xbf16, #tpu.memory_space<vmem>>, vector<32x64xbf16>
    %cst = arith.constant dense<0.000000e+00> : vector<32x128xf32>
    %2 = tpu.matmul %1, %0, %cst {dimension_numbers = #tpu.dot_dimension_numbers<[1], [0], [0], [1], [0, 0, 1, 1], [], []>} : vector<32x64xbf16>, vector<64x128xbf16>, vector<32x128xf32> -> vector<32x128xf32>
    %c0_3 = arith.constant 0 : index
    %c0_4 = arith.constant 0 : index
    %3 = vector.load %arg2[%c0_3, %c0_4] : memref<32x1xf32, #tpu.memory_space<vmem>>, vector<32x1xf32>
    %4 = tpu.reciprocal %3 {approx = true} : vector<32x1xf32> -> vector<32x1xf32>
    %5 = vector.broadcast %4 : vector<32x1xf32> to vector<32x128xf32>
    %6 = arith.mulf %2, %5 : vector<32x128xf32>
    %7 = arith.truncf %6 : vector<32x128xf32> to vector<32x128xbf16>
    %8 = vector.extract_strided_slice %0 {offsets = [0, 0], sizes = [32, 128], strides = [1, 1]} : vector<64x128xbf16> to vector<32x128xbf16>
    %9 = tpu.concatenate %7, %8 in 1 : vector<32x128xbf16>, vector<32x128xbf16> -> vector<32x256xbf16>
    %c0_5 = arith.constant 0 : index
    %c0_6 = arith.constant 0 : index
    %10 = vector.load %arg3[%c0_5, %c0_6] : memref<256x128xbf16, #tpu.memory_space<vmem>>, vector<256x128xbf16>
    %cst_7 = arith.constant dense<0.000000e+00> : vector<32x128xf32>
    %11 = tpu.matmul %9, %10, %cst_7 {dimension_numbers = #tpu.dot_dimension_numbers<[1], [0], [0], [1], [0, 0, 1, 1], [], []>} : vector<32x256xbf16>, vector<256x128xbf16>, vector<32x128xf32> -> vector<32x128xf32>
    %c0_8 = arith.constant 0 : index
    %c0_9 = arith.constant 0 : index
    %12 = vector.load %arg4[%c0_8, %c0_9] : memref<1x128xf32, #tpu.memory_space<vmem>>, vector<1x128xf32>
    %13 = vector.broadcast %12 : vector<1x128xf32> to vector<32x128xf32>
    %14 = arith.addf %11, %13 : vector<32x128xf32>
    %cst_10 = arith.constant 0.000000e+00 : f32
    %15 = vector.broadcast %cst_10 : f32 to vector<32x128xf32>
    %16 = arith.maximumf %14, %15 : vector<32x128xf32>
    %17 = arith.truncf %16 : vector<32x128xf32> to vector<32x128xbf16>
    %c0_11 = arith.constant 0 : index
    %c0_12 = arith.constant 0 : index
    %18 = vector.load %arg5[%c0_11, %c0_12] : memref<16x32xbf16, #tpu.memory_space<vmem>>, vector<16x32xbf16>
    %cst_13 = arith.constant dense<0.000000e+00> : vector<16x128xf32>
    %19 = tpu.matmul %18, %17, %cst_13 {dimension_numbers = #tpu.dot_dimension_numbers<[1], [0], [0], [1], [0, 0, 1, 1], [], []>} : vector<16x32xbf16>, vector<32x128xbf16>, vector<16x128xf32> -> vector<16x128xf32>
    %c0_14 = arith.constant 0 : index
    %c0_15 = arith.constant 0 : index
    %20 = vector.load %arg6[%c0_14, %c0_15] : memref<16x1xf32, #tpu.memory_space<vmem>>, vector<16x1xf32>
    %21 = tpu.reciprocal %20 {approx = true} : vector<16x1xf32> -> vector<16x1xf32>
    %22 = vector.broadcast %21 : vector<16x1xf32> to vector<16x128xf32>
    %23 = arith.mulf %19, %22 : vector<16x128xf32>
    %24 = arith.truncf %23 : vector<16x128xf32> to vector<16x128xbf16>
    %25 = vector.extract_strided_slice %17 {offsets = [0, 0], sizes = [16, 128], strides = [1, 1]} : vector<32x128xbf16> to vector<16x128xbf16>
    %26 = tpu.concatenate %24, %25 in 1 : vector<16x128xbf16>, vector<16x128xbf16> -> vector<16x256xbf16>
    %c0_16 = arith.constant 0 : index
    %c0_17 = arith.constant 0 : index
    %27 = vector.load %arg7[%c0_16, %c0_17] : memref<256x128xbf16, #tpu.memory_space<vmem>>, vector<256x128xbf16>
    %cst_18 = arith.constant dense<0.000000e+00> : vector<16x128xf32>
    %28 = tpu.matmul %26, %27, %cst_18 {dimension_numbers = #tpu.dot_dimension_numbers<[1], [0], [0], [1], [0, 0, 1, 1], [], []>} : vector<16x256xbf16>, vector<256x128xbf16>, vector<16x128xf32> -> vector<16x128xf32>
    %c0_19 = arith.constant 0 : index
    %c0_20 = arith.constant 0 : index
    %29 = vector.load %arg8[%c0_19, %c0_20] : memref<1x128xf32, #tpu.memory_space<vmem>>, vector<1x128xf32>
    %30 = vector.broadcast %29 : vector<1x128xf32> to vector<16x128xf32>
    %31 = arith.addf %28, %30 : vector<16x128xf32>
    %32 = tpu.iota {dimensions = array<i32: 1>} : vector<16x128xi32>
    %c8_i32 = arith.constant 8 : i32
    %33 = vector.broadcast %c8_i32 : i32 to vector<16x128xi32>
    %34 = arith.cmpi slt, %32, %33 : vector<16x128xi32>
    %cst_21 = arith.constant -1.000000e+30 : f32
    %35 = vector.broadcast %cst_21 : f32 to vector<16x128xf32>
    %36 = arith.select %34, %31, %35 : vector<16x128xi1>, vector<16x128xf32>
    %cst_22 = arith.constant dense<0xFF800000> : vector<16xf32>
    %37 = vector.multi_reduction <maximumf>, %36, %cst_22 [1] : vector<16x128xf32> to vector<16xf32>
    %38 = vector.shape_cast %37 : vector<16xf32> to vector<16x1xf32>
    %39 = vector.broadcast %38 : vector<16x1xf32> to vector<16x128xf32>
    %40 = arith.subf %36, %39 : vector<16x128xf32>
    %41 = math.exp %40 : vector<16x128xf32>
    %cst_23 = arith.constant dense<0.000000e+00> : vector<16xf32>
    %42 = vector.multi_reduction <add>, %41, %cst_23 [1] : vector<16x128xf32> to vector<16xf32>
    %43 = vector.shape_cast %42 : vector<16xf32> to vector<16x1xf32>
    %44 = math.log %43 : vector<16x1xf32>
    %45 = vector.broadcast %44 : vector<16x1xf32> to vector<16x128xf32>
    %46 = arith.subf %40, %45 : vector<16x128xf32>
    %c0_24 = arith.constant 0 : index
    %c0_25 = arith.constant 0 : index
    %47 = vector.load %arg9[%c0_24, %c0_25] : memref<16x128xf32, #tpu.memory_space<vmem>>, vector<16x128xf32>
    tpu.vector_store %arg9[%c0_24, %c0_25], %46 {strides = array<i32>} : memref<16x128xf32, #tpu.memory_space<vmem>>, vector<16x128xf32>,
    return
  }
}

</mosaic_0001>

<bundles_post_ra>
// kernel: tpu_custom_call.1
= control target key start
LH: loop header
LB: loop body
LE: loop exit
PB: predicated region body
PF: predicated region fallthrough
CT: control target
= control target key end

     0   :  { %14 = vsyncpa [#allocation3], 0  ;;  %s1092_s0 = inlined_call_operand.vmem [shape: bf16[64,128], index: 0, kind: input, shape index: {}]   ;;  %s1093_s1 = inlined_call_operand.vmem [shape: bf16[32,64], index: 1, kind: input, shape index: {}]   ;;  %s1094_s2 = inlined_call_operand.vmem [shape: f32[32,1], index: 2, kind: input, shape index: {}]   ;;  %s1095_s3 = inlined_call_operand.hbm [shape: bf16[256,128], index: 3, kind: input, shape index: {}]   ;;  %s1096_s4 = inlined_call_operand.vmem [shape: f32[1,128], index: 4, kind: input, shape index: {}]   ;;  %s1097_s5 = inlined_call_operand.vmem [shape: bf16[16,32], index: 5, kind: input, shape index: {}]   ;;  %s1098_s6 = inlined_call_operand.vmem [shape: f32[16,1], index: 6, kind: input, shape index: {}]   ;;  %s1099_s7 = inlined_call_operand.hbm [shape: bf16[256,128], index: 7, kind: input, shape index: {}]   ;;  %s1100_s8 = inlined_call_operand.vmem [shape: f32[1,128], index: 8, kind: input, shape index: {}]   ;;  %s1101_s9 = inlined_call_operand.hbm [shape: f32[16,128], index: 9, kind: output, shape index: {}]  }
   0x1   :  { %15 = vsyncpa [#allocation6], 0 }
   0x2   :  { %16 = vsyncpa [#allocation4], 0  ;;  %s944_s30 = smov [#allocation2]   ;;  %s872_s13 = scalar_lea.hbm %s1095_s3, 2048 }
   0x3   :  { %s28_s10 = sshll.u32 %s944_s30, 4  ;;  %p873_p0 = scmp.ne.s32.totalorder %s1095_s3, %s872_s13  ;;  %s29_s10 = int_to_ptr.vmem [resolvable:$true] %s28_s10 }
   0x4   :  { %p876_p1 = scmp.lt.u32.totalorder %s872_s13, %s1095_s3 }
   0x6   :  { %p878_p2 = pnand %p876_p1, %p873_p0 }
   0x8   :  { %881 = shalt.err (!%p878_p2)
}
   0x9   :  { %s882_s18 = scalar_lea.vmem %s29_s10, 2048  ;;  %p887_p4 = scmp.lt.s32.totalorder %s29_s10, %s29_s10 }
   0xa   :  { %p883_p3 = scmp.ne.s32.totalorder %s29_s10, %s882_s18  ;;  %p888_p5 = scmp.lt.s32.totalorder %s882_s18, %s882_s18 }
   0xc   :  { %p889_p6 = por %p888_p5, %p887_p4 }
   0xe   :  { %p890_p7 = pnand %p889_p6, %p883_p3 }
  0x10   :  { %893 = shalt.err (!%p890_p7)
}
  0x11   :  { %s945_s19 = smov 64   ;;  %s946_s20 = smov 4  }
  0x12   :  { %34 = dma.hbm_to_vmem [thread:$0]  %s1095_s3, 2048, %s29_s10, [#allocation3], %s945_s19, %s945_s19, %s946_s20  }
  0x13   :  { %s947_s23 = smov [#allocation5]   ;;  %s894_s27 = scalar_lea.hbm %s1099_s7, 2048 }
  0x14   :  { %s46_s24 = sshll.u32 %s947_s23, 4  ;;  %p895_p8 = scmp.ne.s32.totalorder %s1099_s7, %s894_s27  ;;  %s47_s24 = int_to_ptr.vmem [resolvable:$true] %s46_s24 }
  0x15   :  { %p898_p9 = scmp.lt.u32.totalorder %s894_s27, %s1099_s7 }
  0x17   :  { %p900_p10 = pnand %p898_p9, %p895_p8 }
  0x19   :  { %903 = shalt.err (!%p900_p10)
}
  0x1a   :  { %s904_s12 = scalar_lea.vmem %s47_s24, 2048  ;;  %p909_p12 = scmp.lt.s32.totalorder %s47_s24, %s47_s24 }
  0x1b   :  { %p905_p11 = scmp.ne.s32.totalorder %s47_s24, %s904_s12  ;;  %p910_p13 = scmp.lt.s32.totalorder %s904_s12, %s904_s12 }
  0x1d   :  { %p911_p0 = por %p910_p13, %p909_p12 }
  0x1f   :  { %p912_p1 = pnand %p911_p0, %p905_p11 }
  0x21   :  { %915 = shalt.err (!%p912_p1)
}
  0x22   :  { %52 = dma.hbm_to_vmem [thread:$0]  %s1099_s7, 2048, %s47_s24, [#allocation6], %s945_s19, %s945_s19, %s946_s20  }
  0x23   :  { %938 = dma.done.wait [#allocation3], 2048  }
  0x24   :  { %939 = vsyncadd [#allocation3], 4294965248 }
  0x25   :  { %940 = dma.done.wait [#allocation6], 2048  }
  0x26   :  { %941 = vsyncadd [#allocation6], 4294965248  ;;  %v948_v0 = vmov 0   ;;  %v813_v1 = vld [vmem:[%s1092_s0] sm:$0xff]   ;;  %v1034_v2 = vld [vmem:[%s1092_s0 + $0x8] sm:$0xff]   ;;  %vm108_vm0 = vcmask 523264  }
  0x27   :  { %811 = vset.pattern.permute.xlu0 %v948_v0  ;;  %812 = vset.pattern.permute.xlu1 %v948_v0  ;;  %v815_v3 = vld [vmem:[%s1092_s0 + $0x10] sm:$0xff]   ;;  %v817_v4 = vld [vmem:[%s1093_s1] sm:$0xff]   ;;  %v165_v6 = vld [vmem:[%s1094_s2 + $0x8] sm:$0xff]  ;;  %v949_v49 = vmov 0.0   ;;  %vm950_vm1 = vmmov 0   ;;  %vm395_vm2 = vcmask 261120  }
  0x28   :  { %781 = vmatprep.subr.bf16.mxu0 %v813_v1  ;;  %365 = vmatprep.mubr.bf16.mxu1 %v813_v1  ;;  %v164_v5 = vld [vmem:[%s1094_s2] sm:$0xff]  ;;  %v166_v7 = vld [vmem:[%s1094_s2 + $0x10] sm:$0xff]  ;;  %v816_v8 = vld [vmem:[%s1092_s0 + $0x18] sm:$0xff]  }
  0x29   :  { %782 = vmatpush3.bf16.msra.mxu0 %v813_v1  ;;  %789 = vmatprep.mubr.msk.bf16.mxu0 %vm108_vm0, %v817_v4  ;;  %852 = vrcp.f32 %v164_v5  ;;  %v167_v9 = vld [vmem:[%s1094_s2 + $0x18] sm:$0xff]  ;;  %v440_v10 = vld [vmem:[%s1098_s6] sm:$0xff]  ;;  %v441_v13 = vld [vmem:[%s1098_s6 + $0x8] sm:$0xff] }
  0x2a   :  { %783 = vmatprep.subr.bf16.mxu0 %v1034_v2  ;;  %854 = vrcp.f32 %v165_v6  ;;  %v819_v11 = vld [vmem:[#allocation2 + $0x40] sm:$0xff]   ;;  %v821_v14 = vld [vmem:[#allocation2 + $0x48] sm:$0xff]   ;;  %v823_v16 = vld [vmem:[#allocation2 + $0x50] sm:$0xff]  }
  0x2b   :  { %856 = vrcp.f32 %v166_v7  ;;  %v820_v12 = vld [vmem:[#allocation2] sm:$0xff]   ;;  %728 = vmatprep.subr.bf16.mxu1 %v819_v11  ;;  %v822_v15 = vld [vmem:[#allocation2 + $0x8] sm:$0xff]   ;;  %v824_v18 = vld [vmem:[#allocation2 + $0x10] sm:$0xff]  }
  0x2c   :  { %858 = vrcp.f32 %v167_v9  ;;  %729 = vmatpush3.bf16.msra.mxu1 %v820_v12  ;;  %v818_v17 = vld [vmem:[%s1093_s1 + $0x8] sm:$0xff]   ;;  %v825_v19 = vld [vmem:[#allocation2 + $0x58] sm:$0xff]   ;;  %v827_v23 = vld [vmem:[#allocation2 + $0x60] sm:$0xff]  }
  0x2d   :  { %784 = vmatpush3.bf16.msra.mxu0 %v1034_v2  ;;  %730 = vmatprep.subr.bf16.mxu1 %v821_v14  ;;  %860 = vrcp.f32 %v440_v10  ;;  %v826_v21 = vld [vmem:[#allocation2 + $0x18] sm:$0xff]   ;;  %v828_v26 = vld [vmem:[#allocation2 + $0x20] sm:$0xff]   ;;  %v829_v27 = vld [vmem:[#allocation2 + $0x68] sm:$0xff]  }
  0x2e   :  { %785 = vmatprep.subr.bf16.mxu0 %v815_v3  ;;  %862 = vrcp.f32 %v441_v13  ;;  %v830_v30 = vld [vmem:[#allocation2 + $0x28] sm:$0xff]   ;;  %v831_v31 = vld [vmem:[#allocation2 + $0x70] sm:$0xff]   ;;  %v833_v33 = vld [vmem:[#allocation2 + $0x78] sm:$0xff]  }
  0x2f   :  { %v832_v32 = vld [vmem:[#allocation2 + $0x30] sm:$0xff]   ;;  %v834_v34 = vld [vmem:[#allocation2 + $0x38] sm:$0xff]   ;;  %v836_v50 = vld [vmem:[#allocation5 + $0x40] sm:$0xff]  }
  0x30   :  { %731 = vmatpush3.bf16.msra.mxu1 %v822_v15  ;;  %v837_v51 = vld [vmem:[#allocation5] sm:$0xff]   ;;  %v838_v52 = vld [vmem:[#allocation5 + $0x48] sm:$0xff]   ;;  %v840_v54 = vld [vmem:[#allocation5 + $0x50] sm:$0xff]  }
  0x31   :  { %786 = vmatpush3.bf16.msra.mxu0 %v815_v3  ;;  %732 = vmatprep.subr.bf16.mxu1 %v823_v16  ;;  %v839_v53 = vld [vmem:[#allocation5 + $0x8] sm:$0xff]   ;;  %v841_v55 = vld [vmem:[#allocation5 + $0x10] sm:$0xff]   ;;  %v842_v56 = vld [vmem:[#allocation5 + $0x58] sm:$0xff]  }
  0x32   :  { %787 = vmatprep.subr.bf16.mxu0 %v816_v8  ;;  %v843_v57 = vld [vmem:[#allocation5 + $0x18] sm:$0xff]   ;;  %v844_v58 = vld [vmem:[#allocation5 + $0x60] sm:$0xff]   ;;  %v846_v60 = vld [vmem:[#allocation5 + $0x68] sm:$0xff]  }
  0x33   :  { %v853_v20 = vpop.eup %852  ;;  %v845_v59 = vld [vmem:[#allocation5 + $0x20] sm:$0xff]   ;;  %v847_v61 = vld [vmem:[#allocation5 + $0x28] sm:$0xff]   ;;  %v848_v62 = vld [vmem:[#allocation5 + $0x70] sm:$0xff]  }
  0x34   :  { %v855_v22 = vpop.eup %854  ;;  %174 = vperm.xlu0 %811, %v853_v20   ;;  %733 = vmatpush3.bf16.msra.mxu1 %v824_v18  ;;  %v686_v0 = vld [vmem:[%s1096_s4] ss:$0 sm:$0xff] }
  0x35   :  { %788 = vmatpush3.bf16.msra.mxu0 %v816_v8  ;;  %v857_v24 = vpop.eup %856  ;;  %734 = vmatprep.subr.bf16.mxu1 %v825_v19 }
  0x36   :  { %184 = vperm.xlu1 %812, %v857_v24   ;;  %v859_v25 = vpop.eup %858  ;;  %759 = vmatprep.subr.bf16.mxu0 %v836_v50  ;;  %v850_v24 = vld [vmem:[#allocation5 + $0x78] sm:$0xff]  }
  0x37   :  { %v861_v28 = vpop.eup %860 }
  0x38   :  { %790 = vmatmul.mubr.msk.bf16.vlgmr.msra.gmra.mrb[0].mxu0 %vm108_vm0, %v818_v17  ;;  %179 = vperm.xlu0 %811, %v855_v22   ;;  %v863_v29 = vpop.eup %862  ;;  %v835_v22 = vld [vmem:[%s1097_s5] sm:$0xff]  }
  0x39   :  { %735 = vmatpush3.bf16.msra.mxu1 %v826_v21  ;;  %760 = vmatpush3.bf16.msra.mxu0 %v837_v51 }
  0x3a   :  { %189 = vperm.xlu1 %812, %v859_v25   ;;  %736 = vmatprep.subr.bf16.mxu1 %v827_v23  ;;  %v849_v23 = vld [vmem:[#allocation5 + $0x30] sm:$0xff]   ;;  %v851_v25 = vld [vmem:[#allocation5 + $0x38] sm:$0xff]  }
  0x3b   :  { %761 = vmatprep.subr.bf16.mxu0 %v838_v52 }
  0x3c   :  { %446 = vperm.xlu0 %811, %v861_v28  }
  0x3d   :  { %737 = vmatpush3.bf16.msra.mxu1 %v828_v26  ;;  %762 = vmatpush3.bf16.msra.mxu0 %v839_v53 }
  0x3e   :  { %451 = vperm.xlu1 %812, %v863_v29   ;;  %738 = vmatprep.subr.bf16.mxu1 %v829_v27 }
  0x3f   :  { %763 = vmatprep.subr.bf16.mxu0 %v840_v54 }
  0x41   :  { %739 = vmatpush3.bf16.msra.mxu1 %v830_v30  ;;  %764 = vmatpush3.bf16.msra.mxu0 %v841_v55 }
  0x42   :  { %740 = vmatprep.subr.bf16.mxu1 %v831_v31  ;;  %765 = vmatprep.subr.bf16.mxu0 %v842_v56 }
  0x45   :  { %741 = vmatpush3.bf16.msra.mxu1 %v832_v32  ;;  %766 = vmatpush3.bf16.msra.mxu0 %v843_v57 }
  0x46   :  { %742 = vmatprep.subr.bf16.mxu1 %v833_v33  ;;  %767 = vmatprep.subr.bf16.mxu0 %v844_v58 }
  0x49   :  { %743 = vmatpush3.bf16.msra.mxu1 %v834_v34  ;;  %768 = vmatpush3.bf16.msra.mxu0 %v845_v59 }
  0x4a   :  { %793 = vmatprep.subr.bf16.mxu1 %v949_v49  ;;  %769 = vmatprep.subr.bf16.mxu0 %v846_v60 }
  0x4d   :  { %770 = vmatpush3.bf16.msra.mxu0 %v847_v61 }
  0x4e   :  { %771 = vmatprep.subr.bf16.mxu0 %v848_v62 }
  0x51   :  { %772 = vmatpush3.bf16.msra.mxu0 %v849_v23 }
  0x52   :  { %773 = vmatprep.subr.bf16.mxu0 %v850_v24 }
  0x55   :  { %774 = vmatpush3.bf16.msra.mxu0 %v851_v25 }
  0xb3   :  { %v175_v36 = vpop.permute.xlu0 %174 }
  0xb5   :  { %v185_v35 = vpop.permute.xlu1 %184 }
  0xb7   :  { %v180_v41 = vpop.permute.xlu0 %179 }
  0xb9   :  { %v190_v38 = vpop.permute.xlu1 %189 }
  0xbb   :  { %v447_v27 = vpop.permute.xlu0 %446 }
  0xbd   :  { %v452_v29 = vpop.permute.xlu1 %451 }
 0x10b   :  { %v791_v37 = vpop.f32.mrb[0].mxu0 }
 0x10c   :  { %v149_v39 = vpop.f32.mrb[1].mxu0  ;;  %v194_v42 = vmul.f32 %v791_v37, %v185_v35  ;;  %v633_v35 = vlaneseq }
 0x10d   :  { %v792_v40 = vpop.f32.mrb[2].mxu0  ;;  %v192_v45 = vmul.f32 %v175_v36, %v149_v39  ;;  %v705_v39 = vld [vmem:[%s1100_s8] ss:$0 sm:$0xff]  ;;  %s951_s8 = smov [#allocation7]  }
 0x10e   :  { %v195_v43 = vmul.f32 %v792_v40, %v190_v38  ;;  %v152_v44 = vpop.f32.mrb[3].mxu0  ;;  %v634_v36 = vand.u32 127, %v633_v35  ;;  %s665_s14 = sshll.u32 %s951_s8, 4  ;;  %s666_s14 = int_to_ptr.vmem [resolvable:$true] %s665_s14 }
 0x10f   :  { %v193_v46 = vmul.f32 %v180_v41, %v152_v44  ;;  %s916_s15 = scalar_lea.vmem %s666_s14, 256  ;;  %p921_p3 = scmp.lt.s32.totalorder %s666_s14, %s666_s14 }
 0x110   :  { %v197_v47 = vpack.c.bf16 %v195_v43, %v194_v42  ;;  %vm635_vm3 = vcmp.lt.s32.totalorder %v634_v36, 8  ;;  %p917_p2 = scmp.ne.s32.totalorder %s666_s14, %s916_s15  ;;  %p922_p4 = scmp.lt.s32.totalorder %s916_s15, %s916_s15 }
 0x111   :  { %v196_v48 = vpack.c.bf16 %v193_v46, %v192_v45 }
 0x112   :  { %p923_p5 = por %p922_p4, %p921_p3 }
 0x113   :  { %366 = vmatmul.mubr.bf16.vlgmr.msra.gmra.mrb[0].mxu1 %v196_v48 }
 0x114   :  { %373 = vmatprep.mubr.bf16.mxu1 %v1034_v2  ;;  %p924_p6 = pnand %p923_p5, %p917_p2 }
 0x11b   :  { %374 = vmatmul.mubr.bf16.gmra.mrb[4].mxu1 %v197_v47 }
 0x11c   :  { %797 = vmatprep.mubr.msk.bf16.mxu1 %vm950_vm1, %v949_v49 }
 0x1e6   :  { %v744_v63 = vpop.f32.mrb[0].mxu1 }
 0x1e7   :  { %v745_v1 = vpop.f32.mrb[1].mxu1 }
 0x1e8   :  { %v746_v2 = vadd.f32 %v745_v1, %v744_v63  ;;  %v747_v3 = vpop.f32.mrb[2].mxu1 }
 0x1e9   :  { %v748_v4 = vpop.f32.mrb[3].mxu1 }
 0x1ea   :  { %v368_v5 = vadd.f32 %v746_v2, %v686_v0  ;;  %v749_v6 = vadd.f32 %v748_v4, %v747_v3 }
 0x1ec   :  { %v371_v7 = vadd.f32 %v749_v6, %v686_v0  ;;  %v382_v8 = vmax.f32 %v368_v5, 0.0 }
 0x1ee   :  { %v383_v9 = vmax.f32 %v371_v7, 0.0  ;;  %v750_v10 = vpop.f32.mrb[4].mxu1 }
 0x1ef   :  { %v751_v11 = vpop.f32.mrb[5].mxu1 }
 0x1f0   :  { %v386_v12 = vpack.c.bf16 %v383_v9, %v382_v8  ;;  %v752_v13 = vadd.f32 %v751_v11, %v750_v10  ;;  %v753_v14 = vpop.f32.mrb[6].mxu1 }
 0x1f1   :  { %v754_v15 = vpop.f32.mrb[7].mxu1 }
 0x1f2   :  { %v376_v16 = vadd.f32 %v752_v13, %v686_v0  ;;  %v755_v17 = vadd.f32 %v754_v15, %v753_v14  ;;  %794 = vmatpush3.bf16.msra.mxu1 %v386_v12  ;;  %624 = vmatprep.mubr.bf16.mxu0 %v386_v12 }
 0x1f3   :  { %795 = vmatprep.subr.bf16.mxu1 %v949_v49 }
 0x1f4   :  { %v379_v18 = vadd.f32 %v755_v17, %v686_v0  ;;  %v384_v19 = vmax.f32 %v376_v16, 0.0 }
 0x1f6   :  { %v385_v20 = vmax.f32 %v379_v18, 0.0 }
 0x1f8   :  { %v387_v21 = vpack.c.bf16 %v385_v20, %v384_v19 }
 0x1fa   :  { %796 = vmatpush3.bf16.msra.mxu1 %v387_v21 }
 0x1fd   :  { %798 = vmatmul.mubr.msk.bf16.vlgmr.msra.gmra.mrb[8].mxu1 %vm395_vm2, %v835_v22 }
 0x2d0   :  { %v433_v26 = vpop.f32.mrb[8].mxu1 }
 0x2d1   :  { %v799_v28 = vpop.f32.mrb[9].mxu1  ;;  %v454_v31 = vmul.f32 %v447_v27, %v433_v26 }
 0x2d2   :  { %v436_v30 = vpop.f32.mrb[10].mxu1 }
 0x2d3   :  { %v455_v32 = vmul.f32 %v452_v29, %v436_v30  ;;  %v800_v33 = vpop.f32.mrb[11].mxu1 }
 0x2d5   :  { %v456_v34 = vpack.c.bf16 %v455_v32, %v454_v31 }
 0x2d7   :  { %625 = vmatmul.mubr.bf16.vlgmr.msra.gmra.mrb[4].mxu0 %v456_v34 }
 0x3aa   :  { %v775_v37 = vpop.f32.mrb[4].mxu0 }
 0x3ab   :  { %v776_v38 = vpop.f32.mrb[5].mxu0 }
 0x3ac   :  { %v777_v40 = vadd.f32 %v776_v38, %v775_v37  ;;  %v778_v41 = vpop.f32.mrb[6].mxu0 }
 0x3ad   :  { %v779_v42 = vpop.f32.mrb[7].mxu0 }
 0x3ae   :  { %v780_v43 = vadd.f32 %v779_v42, %v778_v41  ;;  %v627_v44 = vadd.f32 %v777_v40, %v705_v39 }
 0x3b0   :  { %v636_v45 = vsel %vm635_vm3, %v627_v44, -1e+30  ;;  %v630_v46 = vadd.f32 %v780_v43, %v705_v39 }
 0x3b1   :  { %638 = vmax.xlane.f32.xlu0 %v636_v45 }
 0x3b2   :  { %v637_v47 = vsel %vm635_vm3, %v630_v46, -1e+30 }
 0x3b3   :  { %640 = vmax.xlane.f32.xlu1 %v637_v47 }
 0x43e   :  { %v639_v48 = vpop.xlane.xlu0 %638 }
 0x43f   :  { %v642_v49 = vsub.f32 %v636_v45, %v639_v48 }
 0x440   :  { %v641_v50 = vpop.xlane.xlu1 %640 }
 0x441   :  { %v644_v51 = vmul.f32 1.442695, %v642_v49  ;;  %v643_v52 = vsub.f32 %v637_v47, %v641_v50 }
 0x443   :  { %864 = vpow2.f32 %v644_v51  ;;  %v646_v53 = vmul.f32 1.442695, %v643_v52 }
 0x445   :  { %866 = vpow2.f32 %v646_v53 }
 0x44d   :  { %v865_v54 = vpop.eup %864 }
 0x44e   :  { %648 = vadd.xlane.f32.xlu0 %v865_v54 }
 0x44f   :  { %v867_v55 = vpop.eup %866 }
 0x452   :  { %650 = vadd.xlane.f32.xlu0 %v867_v55 }
 0x4db   :  { %v649_v56 = vpop.xlane.xlu0 %648 }
 0x4dc   :  { %868 = vlog2.f32 %v649_v56 }
 0x4df   :  { %v651_v57 = vpop.xlane.xlu0 %650 }
 0x4e0   :  { %870 = vlog2.f32 %v651_v57 }
 0x4e6   :  { %v869_v58 = vpop.eup %868 }
 0x4e7   :  { %v653_v59 = vmul.f32 0.6931472, %v869_v58 }
 0x4e9   :  { %v656_v60 = vsub.f32 %v642_v49, %v653_v59 }
 0x4ea   :  { %v871_v61 = vpop.eup %870 }
 0x4eb   :  { %658 = vst [vmem:[#allocation7] sm:$0xff] %v656_v60  ;;  %v655_v62 = vmul.f32 0.6931472, %v871_v61 }
 0x4ed   :  { %v657_v63 = vsub.f32 %v643_v52, %v655_v62 }
 0x4ef   :  { %659 = vst [vmem:[#allocation7 + $0x8] sm:$0xff] %v657_v63 }
 0x4f0   :  { %927 = shalt.err (!%p924_p6)
}
 0x4f1   :  { %s928_s17 = scalar_lea.hbm %s1101_s9, 256 }
 0x4f2   :  { %p929_p7 = scmp.ne.s32.totalorder %s1101_s9, %s928_s17  ;;  %p932_p8 = scmp.lt.u32.totalorder %s928_s17, %s1101_s9 }
 0x4f4   :  { %p934_p9 = pnand %p932_p8, %p929_p7 }
 0x4f6   :  { %937 = shalt.err (!%p934_p9)
}
 0x4f7   :  { %s952_s22 = smov 128   ;;  %s953_s23 = smov 8  }
 0x4f8   :  { %671 = dma.vmem_to_hbm [thread:$0]  %s666_s14, 256, %s1101_s9, [#allocation4], %s952_s22, %s952_s22, %s953_s23  }
 0x4f9   :  { %942 = dma.done.wait [#allocation4], 256  }
 0x4fa   :  { %943 = vsyncadd [#allocation4], 4294967040 }
 0x4fb   :  { %675 = vsyncpa [#allocation3], 1 }
 0x4fc   :  { %676 = vsyncpa [#allocation6], 1 }
 0x4fd   :  { %677 = vsyncpa [#allocation4], 1 }

</bundles_post_ra>
